<compile_context>
chip_gen: v6e
topology: v6e:2x2x1
jax: 0.10.0
libtpu: 0.0.40
codegen_flags: <defaults>
</compile_context>

<pallas_src>
import jax
import jax.numpy as jnp
from jax.experimental import pallas as pl
from jax.experimental.pallas import tpu as pltpu


def _round_up(x: int, m: int) -> int:
    return -(-x // m) * m


def _choose_tile_seq(seq: int, dim_p: int, halo: int) -> int:
    # Keep the double-buffered (in + out) seq blocks around <= ~16 MiB so the
    # working set (plus the resident pointwise weight and in-kernel temps)
    # stays well under the scoped-VMEM limit on every generation.
    budget = 16 * 1024 * 1024
    per_row = 4 * dim_p * 4            # 2 bufs x (in + out) x f32
    t = max(halo, min(1024, budget // per_row))
    t = max((t // halo) * halo, halo)  # multiple of the halo block (>= 8)
    return seq if seq <= t else t


def _make_kernel(tile_seq: int, dim_p: int, k: int, halo: int):
    def kernel(x_ref, h_ref, wdw_ref, wpw_ref, bpw_ref, o_ref):
        # x_ref:   (1, tile_seq, dim_p)  current seq tile
        # h_ref:   (1, halo, dim_p)      rows right before the tile (history)
        # wdw_ref: (k, dim_p)            depthwise weights (tap j, all channels)
        # wpw_ref: (dim_p, dim_p)        pointwise weights (c_in, c_out), bf16
        # bpw_ref: (1, dim_p)            effective bias = b_pw + W_pw @ b_dw
        # o_ref:   (1, tile_seq, dim_p)
        s = pl.program_id(1)
        x = x_ref[0]                                   # (tile_seq, dim_p)
        h = h_ref[0]                                   # (halo, dim_p)
        # Causal boundary: the first seq tile has no history -> zero halo.
        h = h * (s > 0).astype(h.dtype)
        buf = jnp.concatenate([h, x], axis=0)          # (halo + tile_seq, dim_p)

        # Depthwise causal conv: y[t] = sum_{d=0}^{k-1} w[k-1-d] * x[t-d].
        # Tap d=0 initializes the accumulator (no zero-init pass; the
        # depthwise bias was folded into bpw on the host).
        y = x * wdw_ref[k - 1:k, :]
        for d in range(1, k):                          # tiny static tap loop
            # rolled[i] = buf[i - d]; the [halo : halo+tile_seq] window is
            # 8-sublane aligned and never wraps (halo >= k-1 >= d).
            shifted = pltpu.roll(buf, shift=d, axis=0)[halo:halo + tile_seq, :]
            y = y + shifted * wdw_ref[k - 1 - d:k - d, :]

        # Pointwise (1x1) conv == matmul over channels: bf16 operands on the
        # MXU, f32 accumulate.
        z = jnp.dot(y.astype(jnp.bfloat16), wpw_ref[...],
                    preferred_element_type=jnp.float32)
        o_ref[0] = (z + bpw_ref[...]).astype(o_ref.dtype)

    return kernel


def causal_depthwise_conv1d(x, w_dw, b_dw, w_pw, b_pw, kernel_size):
    """x: (batch, seq, dim).
    w_dw: (dim, kernel_size)   depthwise weight (== torch weight[:, 0, :]).
    b_dw: (dim,)               depthwise bias.
    w_pw: (dim_out, dim_in)    pointwise weight (== torch weight[:, :, 0]).
    b_pw: (dim_out,)           pointwise bias.
    Returns (batch, seq, dim)."""
    batch, seq, dim = x.shape
    k = int(kernel_size)
    halo = max(8, _round_up(k - 1, 8))       # history rows needed per tile

    # Lane-dense channel axis (production dims are usually already a multiple
    # of 128; the pad path only triggers for odd test sizes).
    dim_p = _round_up(dim, 128)
    # Tiny-seq guard so the halo lookback block is always in-bounds.
    seq_p = max(seq, halo)

    xw = x
    if seq_p != seq or dim_p != dim:
        xw = jnp.pad(x, ((0, 0), (0, seq_p - seq), (0, dim_p - dim)))

    f32 = jnp.float32
    wdw = jnp.pad(w_dw.astype(f32).T, ((0, 0), (0, dim_p - dim)))        # (k, dim_p)
    wpw = jnp.pad(w_pw.astype(f32).T, ((0, dim_p - dim), (0, dim_p - dim)))
    wpw = wpw.astype(jnp.bfloat16)                                       # MXU operand
    # Fold the depthwise bias into the pointwise bias (done in f32 on host):
    #   (y + b_dw) @ W + b_pw == y @ W + (b_pw + W_pw @ b_dw)
    b_eff = b_pw.astype(f32) + w_pw.astype(f32) @ b_dw.astype(f32)       # (dim,)
    bpw = jnp.pad(b_eff.reshape(1, dim), ((0, 0), (0, dim_p - dim)))     # (1, dim_p)

    tile_seq = _choose_tile_seq(seq_p, dim_p, halo)
    n_seq_tiles = pl.cdiv(seq_p, tile_seq)
    halo_blocks = max(tile_seq // halo, 1)

    kernel = _make_kernel(tile_seq, dim_p, k, halo)

    out = pl.pallas_call(
        kernel,
        out_shape=jax.ShapeDtypeStruct((batch, seq_p, dim_p), x.dtype),
        grid_spec=pltpu.PrefetchScalarGridSpec(
            num_scalar_prefetch=0,
            grid=(batch, n_seq_tiles),
            in_specs=[
                # current seq tile
                pl.BlockSpec((1, tile_seq, dim_p), lambda b, s: (b, s, 0)),
                # halo: rows [s*tile_seq - halo, s*tile_seq), clamped at the
                # sequence start (tile 0 zeroes it in-kernel -> causal pad)
                pl.BlockSpec(
                    (1, halo, dim_p),
                    lambda b, s: (b, jnp.maximum(s * halo_blocks - 1, 0), 0)),
                pl.BlockSpec((k, dim_p), lambda b, s: (0, 0)),
                # TODO(synk): for very large dim (>~3k) the (dim, dim) pointwise
                # weight should additionally be tiled along its output axis.
                pl.BlockSpec((dim_p, dim_p), lambda b, s: (0, 0)),
                pl.BlockSpec((1, dim_p), lambda b, s: (0, 0)),
            ],
            out_specs=pl.BlockSpec((1, tile_seq, dim_p), lambda b, s: (b, s, 0)),
        ),
        compiler_params=pltpu.CompilerParams(
            dimension_semantics=("parallel", "parallel"),
            vmem_limit_bytes=48 * 1024 * 1024,
        ),
    )(xw, xw, wdw, wpw, bpw)

    if seq_p != seq or dim_p != dim:
        out = out[:, :seq, :dim]
    return out


def _reference(x, w_dw, b_dw, w_pw, b_pw, k):
    # Plain-JAX reference mirroring the PyTorch forward (pure f32).
    batch, seq_len, dim = x.shape
    x_pad = jnp.pad(x, ((0, 0), (k - 1, 0), (0, 0)))  # (B, S+k-1, D)
    y = jnp.zeros((batch, seq_len, dim), jnp.float32)
    for j in range(k):
        y = y + x_pad[:, j:j + seq_len, :] * w_dw[:, j][None, None, :]
    y = y + b_dw[None, None, :]
    z = jnp.einsum("bsd,od->bso", y, w_pw) + b_pw[None, None, :]
    return z


if __name__ == "__main__":
    batch, seq_len, dim, kernel_size = 2, 16, 32, 3

    key = jax.random.PRNGKey(0)
    kx, k1, k2, k3, k4 = jax.random.split(key, 5)

    x = jax.random.normal(kx, (batch, seq_len, dim), dtype=jnp.float32)

    # Parameter shapes follow nn.Conv1d in the module:
    #   depthwise: weight (dim, 1, kernel_size) -> (dim, kernel_size), bias (dim,)
    #   pointwise: weight (dim, dim, 1)         -> (dim, dim),         bias (dim,)
    w_dw = 0.1 * jax.random.normal(k1, (dim, kernel_size), dtype=jnp.float32)
    b_dw = 0.1 * jax.random.normal(k2, (dim,), dtype=jnp.float32)
    w_pw = 0.1 * jax.random.normal(k3, (dim, dim), dtype=jnp.float32)
    b_pw = 0.1 * jax.random.normal(k4, (dim,), dtype=jnp.float32)

    out = causal_depthwise_conv1d(x, w_dw, b_dw, w_pw, b_pw, kernel_size)
    out = jax.block_until_ready(out)

    ref = _reference(x, w_dw, b_dw, w_pw, b_pw, kernel_size)
    assert out.shape == (batch, seq_len, dim)
    # bf16 MXU operands (f32 accumulate) -> slightly looser tolerance than pure f32.
    assert jnp.allclose(out, ref, atol=1e-2, rtol=1e-2), "mismatch vs reference"

    print("KERNEL_OK")
</pallas_src>

<mosaic_0001>
module attributes {stable_mosaic.version = 11 : i64} {
  func.func @kernel(%arg0: i32, %arg1: i32, %arg2: memref<1x16x128xf32, #tpu.memory_space<vmem>>, %arg3: memref<1x8x128xf32, #tpu.memory_space<vmem>>, %arg4: memref<3x128xf32, #tpu.memory_space<vmem>>, %arg5: memref<128x128xbf16, #tpu.memory_space<vmem>>, %arg6: memref<1x128xf32, #tpu.memory_space<vmem>>, %arg7: memref<1x16x128xf32, #tpu.memory_space<vmem>>) attributes {dimension_semantics = [#tpu.dimension_semantics<parallel>, #tpu.dimension_semantics<parallel>], iteration_bounds = array<i64: 2, 1>, scalar_prefetch = 0 : i64, scratch_operands = 0 : i64, tpu.core_type = #tpu.core_type<tc>, window_params = [{transform_indices = @transform_0, window_bounds = array<i64: 1, 16, 128>}, {transform_indices = @transform_1, window_bounds = array<i64: 1, 8, 128>}, {pipeline_mode = #tpu.pipeline_mode<synchronous>, transform_indices = @transform_2, window_bounds = array<i64: 3, 128>}, {pipeline_mode = #tpu.pipeline_mode<synchronous>, transform_indices = @transform_3, window_bounds = array<i64: 128, 128>}, {pipeline_mode = #tpu.pipeline_mode<synchronous>, transform_indices = @transform_4, window_bounds = array<i64: 1, 128>}, {transform_indices = @transform_5, window_bounds = array<i64: 1, 16, 128>}]} {
    %c0 = arith.constant 0 : index
    %c0_0 = arith.constant 0 : index
    %c0_1 = arith.constant 0 : index
    %0 = vector.load %arg2[%c0, %c0_0, %c0_1] : memref<1x16x128xf32, #tpu.memory_space<vmem>>, vector<1x16x128xf32>
    %1 = vector.shape_cast %0 : vector<1x16x128xf32> to vector<16x128xf32>
    %c0_2 = arith.constant 0 : index
    %c0_3 = arith.constant 0 : index
    %c0_4 = arith.constant 0 : index
    %2 = vector.load %arg3[%c0_2, %c0_3, %c0_4] : memref<1x8x128xf32, #tpu.memory_space<vmem>>, vector<1x8x128xf32>
    %3 = vector.shape_cast %2 : vector<1x8x128xf32> to vector<8x128xf32>
    %c0_i32 = arith.constant 0 : i32
    %4 = arith.cmpi sgt, %arg1, %c0_i32 : i32
    %5 = arith.extui %4 : i1 to i32
    %6 = arith.sitofp %5 : i32 to f32
    %7 = vector.broadcast %6 : f32 to vector<8x128xf32>
    %8 = arith.mulf %3, %7 : vector<8x128xf32>
    %9 = tpu.concatenate %8, %1 in 0 : vector<8x128xf32>, vector<16x128xf32> -> vector<24x128xf32>
    %c2 = arith.constant 2 : index
    %c0_5 = arith.constant 0 : index
    %10 = vector.load %arg4[%c2, %c0_5] : memref<3x128xf32, #tpu.memory_space<vmem>>, vector<1x128xf32>
    %11 = vector.broadcast %10 : vector<1x128xf32> to vector<16x128xf32>
    %12 = arith.mulf %1, %11 : vector<16x128xf32>
    %c1_i32 = arith.constant 1 : i32
    %13 = tpu.dynamic_rotate %9 by %c1_i32 dim 0 : vector<24x128xf32>, i32 -> vector<24x128xf32>
    %14 = vector.extract_strided_slice %13 {offsets = [8, 0], sizes = [16, 128], strides = [1, 1]} : vector<24x128xf32> to vector<16x128xf32>
    %c1 = arith.constant 1 : index
    %c0_6 = arith.constant 0 : index
    %15 = vector.load %arg4[%c1, %c0_6] : memref<3x128xf32, #tpu.memory_space<vmem>>, vector<1x128xf32>
    %16 = vector.broadcast %15 : vector<1x128xf32> to vector<16x128xf32>
    %17 = arith.mulf %14, %16 : vector<16x128xf32>
    %18 = arith.addf %12, %17 : vector<16x128xf32>
    %c2_i32 = arith.constant 2 : i32
    %19 = tpu.dynamic_rotate %9 by %c2_i32 dim 0 : vector<24x128xf32>, i32 -> vector<24x128xf32>
    %20 = vector.extract_strided_slice %19 {offsets = [8, 0], sizes = [16, 128], strides = [1, 1]} : vector<24x128xf32> to vector<16x128xf32>
    %c0_7 = arith.constant 0 : index
    %c0_8 = arith.constant 0 : index
    %21 = vector.load %arg4[%c0_7, %c0_8] : memref<3x128xf32, #tpu.memory_space<vmem>>, vector<1x128xf32>
    %22 = vector.broadcast %21 : vector<1x128xf32> to vector<16x128xf32>
    %23 = arith.mulf %20, %22 : vector<16x128xf32>
    %24 = arith.addf %18, %23 : vector<16x128xf32>
    %25 = arith.truncf %24 : vector<16x128xf32> to vector<16x128xbf16>
    %c0_9 = arith.constant 0 : index
    %c0_10 = arith.constant 0 : index
    %26 = vector.load %arg5[%c0_9, %c0_10] : memref<128x128xbf16, #tpu.memory_space<vmem>>, vector<128x128xbf16>
    %cst = arith.constant dense<0.000000e+00> : vector<16x128xf32>
    %27 = tpu.matmul %25, %26, %cst {dimension_numbers = #tpu.dot_dimension_numbers<[1], [0], [0], [1], [0, 0, 1, 1], [], []>} : vector<16x128xbf16>, vector<128x128xbf16>, vector<16x128xf32> -> vector<16x128xf32>
    %c0_11 = arith.constant 0 : index
    %c0_12 = arith.constant 0 : index
    %28 = vector.load %arg6[%c0_11, %c0_12] : memref<1x128xf32, #tpu.memory_space<vmem>>, vector<1x128xf32>
    %29 = vector.broadcast %28 : vector<1x128xf32> to vector<16x128xf32>
    %30 = arith.addf %27, %29 : vector<16x128xf32>
    %c0_13 = arith.constant 0 : index
    %c0_14 = arith.constant 0 : index
    %c0_15 = arith.constant 0 : index
    %31 = vector.load %arg7[%c0_13, %c0_14, %c0_15] : memref<1x16x128xf32, #tpu.memory_space<vmem>>, vector<1x16x128xf32>
    %32 = vector.shape_cast %31 : vector<1x16x128xf32> to vector<16x128xf32>
    %33 = vector.shape_cast %30 : vector<16x128xf32> to vector<1x16x128xf32>
    tpu.vector_store %arg7[%c0_13, %c0_14, %c0_15], %33 {strides = array<i32>} : memref<1x16x128xf32, #tpu.memory_space<vmem>>, vector<1x16x128xf32>,
    return
  }
  func.func @transform_0(%arg0: i32, %arg1: i32) -> (i32, i32, i32) {
    %c0_i32 = arith.constant 0 : i32
    %c0_i32_0 = arith.constant 0 : i32
    return %arg0, %arg1, %c0_i32 : i32, i32, i32
  }
  func.func @transform_1(%arg0: i32, %arg1: i32) -> (i32, i32, i32) {
    %c2_i32 = arith.constant 2 : i32
    %0 = arith.muli %arg1, %c2_i32 : i32
    %c1_i32 = arith.constant 1 : i32
    %1 = arith.subi %0, %c1_i32 : i32
    %c0_i32 = arith.constant 0 : i32
    %2 = arith.maxsi %1, %c0_i32 : i32
    %c0_i32_0 = arith.constant 0 : i32
    %c0_i32_1 = arith.constant 0 : i32
    return %arg0, %2, %c0_i32_0 : i32, i32, i32
  }
  func.func @transform_2(%arg0: i32, %arg1: i32) -> (i32, i32) {
    %c0_i32 = arith.constant 0 : i32
    %c0_i32_0 = arith.constant 0 : i32
    %c0_i32_1 = arith.constant 0 : i32
    return %c0_i32, %c0_i32_0 : i32, i32
  }
  func.func @transform_3(%arg0: i32, %arg1: i32) -> (i32, i32) {
    %c0_i32 = arith.constant 0 : i32
    %c0_i32_0 = arith.constant 0 : i32
    %c0_i32_1 = arith.constant 0 : i32
    return %c0_i32, %c0_i32_0 : i32, i32
  }
  func.func @transform_4(%arg0: i32, %arg1: i32) -> (i32, i32) {
    %c0_i32 = arith.constant 0 : i32
    %c0_i32_0 = arith.constant 0 : i32
    %c0_i32_1 = arith.constant 0 : i32
    return %c0_i32, %c0_i32_0 : i32, i32
  }
  func.func @transform_5(%arg0: i32, %arg1: i32) -> (i32, i32, i32) {
    %c0_i32 = arith.constant 0 : i32
    %c0_i32_0 = arith.constant 0 : i32
    return %arg0, %arg1, %c0_i32 : i32, i32, i32
  }
}

</mosaic_0001>

<bundles_post_ra>
// kernel: tpu_custom_call.1
= control target key start
LH: loop header
LB: loop body
LE: loop exit
PB: predicated region body
PF: predicated region fallthrough
CT: control target
= control target key end

     0   :  { %s1305_s0 = inlined_call_operand.hbm [shape: f32[2,16,128], index: 0, kind: input, shape index: {}]   ;;  %s1306_s1 = inlined_call_operand.hbm [shape: f32[2,16,128], index: 1, kind: input, shape index: {}]   ;;  %s1307_s2 = inlined_call_operand.hbm [shape: f32[3,128], index: 2, kind: input, shape index: {}]   ;;  %s1308_s3 = inlined_call_operand.hbm [shape: bf16[128,128], index: 3, kind: input, shape index: {}]   ;;  %s1309_s4 = inlined_call_operand.vmem [shape: f32[1,128], index: 4, kind: input, shape index: {}]   ;;  %s1310_s5 = inlined_call_operand.hbm [shape: f32[2,16,128], index: 5, kind: output, shape index: {}]  }
   0x1   :  { %1321 = sst [smem:[#allocation19_spill]] %s1305_s0 }
   0x2   :  { %1322 = sst [smem:[#allocation20_spill]] %s1307_s2 }
   0x3   :  { %1323 = sst [smem:[#allocation21_spill]] %s1308_s3 }
   0x4   :  { %1324 = sst [smem:[#allocation22_spill]] %s1310_s5 }
   0x5   :  { %10 = vsyncpa [#allocation3], 0 }
   0x6   :  { %12 = vsyncpa [#allocation3 + $0x1], 0 }
   0x7   :  { %13 = vsyncpa [#allocation6], 0 }
   0x8   :  { %15 = vsyncpa [#allocation6 + $0x1], 0 }
   0x9   :  { %16 = vsyncpa [#allocation9], 0 }
   0xa   :  { %17 = vsyncpa [#allocation4], 0 }
   0xb   :  { %19 = vsyncpa [#allocation4 + $0x1], 0  ;;  %s1073_s18 = smov 0   ;;  %s1075_s19 = smov 0  }
   0xc   :  { %s1077_s20 = smov 0   ;;  %s1079_s21 = smov 0  }
   0xd   :  { %s1081_s22 = smov 0   ;;  %s1083_s23 = smov 0  }
   0xe LB: > { %1325 = sst [smem:[#allocation16_spill]] %s1008_s18  ;;  %s1104_s24 = sadd.s32 4294967295, %s1028_s23   ;;  %s1028_s23 = sphi %s1083_s23, %s25_s23   ;;  %s1024_s22 = sphi %s1081_s22, %s1359_s22   ;;  %s1020_s21 = sphi %s1079_s21, %s1358_s21   ;;  %s1016_s20 = sphi %s1077_s20, %s1357_s20   ;;  %s1012_s19 = sphi %s1075_s19, %s1356_s19   ;;  %s1008_s18 = sphi %s1073_s18, %s1355_s18  }
   0xf   : > { %s658_s25 = sadd.s32 4294967294, %s1028_s23   ;;  %p53_p0 = scmp.ne.s32.totalorder %s1016_s20, %s1012_s19 }
  0x10   : > { %p54_p1 = scmp.eq.s32.totalorder %s1028_s23, 0  ;;  %p59_p2 = scmp.ne.s32.totalorder %s1012_s19, %s1008_s18 }
  0x11   : > { %p1312_p3 = scmp.eq.s32.totalorder %s1104_s24, 0  ;;  %p184_p4 = scmp.eq.s32.totalorder %s1104_s24, 1 }
  0x12   : > { %p1115_p5 = por %p54_p1, %p53_p0  ;;  %p190_p6 = scmp.eq.s32.totalorder %s658_s25, 1 }
  0x13   : > { %p1121_p7 = por %p1312_p3, %p59_p2  ;;  %p1125_p8 = por %p184_p4, %p53_p0 }
  0x14   : > { %p1129_p9 = por %p190_p6, %p59_p2  ;;  %p659_p10 = scmp.ge.s32.totalorder %s1028_s23, 1 }
  0x15   : > { %s1327_s28 = scalar_select %p1121_p7, 1, 0 }
  0x16   : > { %s1328_s29 = scalar_select %p1125_p8, 1, 0 }
  0x17   : > { %s1329_s30 = scalar_select %p1129_p9, 1, 0 }
  0x18   : > { %p197_p11 = scmp.lt.s32.totalorder %s1028_s23, 3  ;;  %s1030_s7 = smov [#allocation7]  }
  0x19   : > { %1330 = sst [smem:[#allocation17_spill]] %s1329_s30  ;;  %s210_s8 = sshll.u32 %s1030_s7, 4  ;;  %s211_s8 = int_to_ptr.vmem [resolvable:$true] %s210_s8 }
  0x1a   : > { %p1136_p13 = pnand %p659_p10, %p197_p11  ;;  %p758_p1 = scmp.lt.s32.totalorder %s1028_s23, 2 }
  0x1b   : > { %s1031_s10 = smov [#allocation8]   ;;  %s839_s13 = scalar_lea.vmem %s211_s8, 64 }
  0x1c   : > { %s1331_s6 = scalar_select %p1136_p13, 1, 0 }
  0x1d   : > { %p738_p0 = pneg %p1136_p13  ;;  %p1145_p4 = pnand %p758_p1, %p1115_p5 }
  0x1e   : > { %s220_s11 = sshll.u32 %s1031_s10, 4  ;;  %p840_p10 = scmp.ne.s32.totalorder %s211_s8, %s839_s13  ;;  %s221_s11 = int_to_ptr.vmem [resolvable:$true] %s220_s11 }
  0x1f   : > { %s1332_s9 = scalar_select %p1145_p4, 1, 0 }
  0x20   : > { %p1151_p2 = pnand %p738_p0, %p1312_p3  ;;  %p847_p1 = scmp.lt.s32.totalorder %s211_s8, %s211_s8 }
  0x21   : > { %p848_p12 = scmp.lt.s32.totalorder %s839_s13, %s839_s13 }
  0x22   : > { %p830_p6 = pneg %p1151_p2 }
  0x23   : > { %p849_p9 = por %p848_p12, %p847_p1 }
  0x24   : > { %p842_p5 = pnand %p840_p10, %p830_p6 }
  0x26   : > { %p843_p11 = pneg %p842_p5 }
  0x28   : > { %p850_p8 = pnand %p849_p9, %p843_p11 }
  0x2a   : > { %853 = shalt.err (!%p850_p8)
}
  0x2b   : > { %s1334_s2 = sld [smem:[#allocation20_spill]]  ;;  %s865_s16 = scalar_lea.vmem %s221_s11, 1024 }
  0x2c   : > { %p866_p0 = scmp.ne.s32.totalorder %s221_s11, %s865_s16  ;;  %p873_p10 = scmp.lt.s32.totalorder %s221_s11, %s221_s11 }
  0x2d   : > { %p874_p5 = scmp.lt.s32.totalorder %s865_s16, %s865_s16 }
  0x2e   : > { %p868_p3 = pnand %p866_p0, %p830_p6 }
  0x2f   : > { %p875_p13 = por %p874_p5, %p873_p10 }
  0x30   : > { %p869_p7 = pneg %p868_p3 }
  0x31   : > { %741 = dma.hbm_to_vmem [thread:$0]  (!%p1151_p2), %s1334_s2, 64, %s211_s8, [#allocation6]  }
  0x32   : > { %p876_p4 = pnand %p875_p13, %p869_p7 }
  0x34   : > { %879 = shalt.err (!%p876_p4)
}
  0x35   : > { %s1032_s17 = smov 64   ;;  %s1033_s25 = smov 4  }
  0x36   : > { %s1335_s3 = sld [smem:[#allocation21_spill]]  ;;  %s1174_s8 = sand.u32 1, %s1016_s20  }
  0x37   : > { %s37_s10 = sadd.s32 1, %s1024_s22  ;;  %s663_s13 = sshll.u32 %s1174_s8, 4 }
  0x38   : > { %p39_p3 = scmp.ge.s32.totalorder %s37_s10, 2  ;;  %s1316_s14 = sshll.u32 %s1024_s22, 8 }
  0x39   : > { %s241_s15 = scalar_lea.vmem [#allocation2], %s663_s13  ;;  %s1337_s0 = sld [smem:[#allocation19_spill]] }
  0x3a   : > { %s250_s16 = sshll.u32 %s241_s15, 4  ;;  %s1361_s10 = smov (%p39_p3, %s37_s10), 0  ;;  %s251_s16 = int_to_ptr.vmem [resolvable:$true] %s250_s16 }
  0x3b   : > { %1336 = sst [smem:[#allocation18_spill]] %s1361_s10  ;;  %p1339_p8 = scmp.ne.s32.totalorder %s1332_s9, 0 }
  0x3c   : > { %744 = dma.hbm_to_vmem [thread:$0]  (!%p1151_p2), %s1335_s3, 1024, %s221_s11, [#allocation9], %s1032_s17, %s1032_s17, %s1033_s25  }
  0x3d   : > { %s41_s11 = ssub.s32 %s1024_s22, %s1361_s10  ;;  %s238_s25 = scalar_lea.sflag [#allocation3], %s1174_s8 }
  0x3e   : > { %p1188_p7 = scmp.eq.s32.totalorder %s41_s11, 0  ;;  %p882_p9 = pneg %p1339_p8 }
  0x3f   : > { %s249_s27 = scalar_lea.hbm %s1337_s0, %s1316_s14  ;;  %s893_s7 = scalar_lea.vmem %s251_s16, 256 }
  0x40   : > { %p894_p12 = scmp.ne.s32.totalorder %s251_s16, %s893_s7  ;;  %s1034_s13 = smov [#allocation2]  }
  0x41   : > { %s898_s15 = sshll.u32 %s1034_s13, 4  ;;  %s899_s15 = int_to_ptr.vmem [resolvable:$false] %s898_s15 }
  0x42   : > { %p896_p13 = pnand %p894_p12, %p882_p9  ;;  %s900_s26 = scalar_lea.vmem %s899_s15, 512 }
  0x43   : > { %p901_p2 = scmp.lt.s32.totalorder %s251_s16, %s899_s15  ;;  %p902_p6 = scmp.lt.s32.totalorder %s900_s26, %s893_s7 }
  0x44   : > { %p897_p4 = pneg %p896_p13 }
  0x45   : > { %p903_p11 = por %p902_p6, %p901_p2 }
  0x47   : > { %p904_p1 = pnand %p903_p11, %p897_p4 }
  0x49   : > { %907 = shalt.err (!%p904_p1)
}
  0x4a   : > { %s1035_s12 = smov 128   ;;  %s1036_s11 = smov 8  }
  0x4b   : > { %748 = dma.hbm_to_vmem [thread:$0]  (!%p1339_p8), %s249_s27, 256, %s251_s16, %s238_s25, %s1035_s12, %s1035_s12, %s1036_s11  }
  0x4c   : > { %s1340_s13 = sadd.s32 1, %s1016_s20  ;;  %s260_s7 = sand.u32 1, %s1028_s23  }
  0x4d   : > { %s1205_s14 = scalar_select %p1188_p7, %s1016_s20, %s1340_s13  }
  0x4e   : > { %s666_s15 = sshll.u32 %s1174_s8, 3  ;;  %s1341_s26 = sshll.u32 %s1024_s22, 8 }
  0x4f   : > { %s275_s3 = scalar_lea.hbm %s1306_s1, %s1341_s26  ;;  %s264_s10 = scalar_lea.vmem [#allocation5], %s666_s15 }
  0x50   : > { %s277_s30 = sshll.u32 %s264_s10, 4  ;;  %s261_s18 = scalar_lea.sflag [#allocation6], %s260_s7  ;;  %s278_s30 = int_to_ptr.vmem [resolvable:$true] %s277_s30 }
  0x51   : > { %s921_s5 = scalar_lea.vmem %s278_s30, 128  ;;  %s1037_s16 = smov [#allocation5]  }
  0x52   : > { %p922_p0 = scmp.ne.s32.totalorder %s278_s30, %s921_s5  ;;  %s926_s27 = sshll.u32 %s1037_s16, 4  ;;  %s927_s27 = int_to_ptr.vmem [resolvable:$false] %s926_s27 }
  0x53   : > { %s928_s17 = scalar_lea.vmem %s927_s27, 256  ;;  %p929_p3 = scmp.lt.s32.totalorder %s278_s30, %s927_s27 }
  0x54   : > { %p924_p10 = pnand %p922_p0, %p882_p9  ;;  %p930_p7 = scmp.lt.s32.totalorder %s928_s17, %s921_s5 }
  0x56   : > { %p925_p5 = pneg %p924_p10  ;;  %p931_p12 = por %p930_p7, %p929_p3 }
  0x58   : > { %p932_p13 = pnand %p931_p12, %p925_p5 }
  0x5a   : > { %935 = shalt.err (!%p932_p13)
}
  0x5b   : > { %751 = dma.hbm_to_vmem [thread:$0]  (!%p1339_p8), %s275_s3, 128, %s278_s30, %s261_s18  }
  0x5c   : > { %p1342_p4 = scmp.ne.s32.totalorder %s1331_s6, 0 }
  0x5d   : > { %s1222_s0 = sand.u32 (!%p1342_p4), 1, %s1012_s19   ;;  %p1343_p9 = scmp.ne.s32.totalorder (!%p1342_p4), %s1327_s28, 0 }
  0x5e   : > { %286 = sbr.rel (%p1342_p4) target bundleno = 356 (0x164), region = 40  ;;  %s670_s2 = sshll.u32 (!%p1342_p4), %s1222_s0, 4 }
  0x5f   : > { %s289_s8 = scalar_lea.sflag (!%p1342_p4), [#allocation3], %s1222_s0  ;;  %s292_s5 = scalar_lea.vmem (!%p1342_p4), [#allocation2], %s670_s2 }
  0x63   : > { %987 = dma.done.wait (%p1343_p9), %s289_s8, 256  }
  0x64   : > { %989 = vsyncadd (%p1343_p9), %s289_s8, 4294967040  ;;  %s297_s3 = sand.u32 1, %s1104_s24   ;;  %s671_s18 = sshll.u32 %s1222_s0, 3 }
  0x65   : > { %s298_s30 = scalar_lea.sflag [#allocation6], %s297_s3  ;;  %s301_s6 = scalar_lea.vmem [#allocation5], %s671_s18 }
  0x66   : > { %991 = dma.done.wait (%p1343_p9), %s298_s30, 128  }
  0x67   : > { %993 = vsyncadd (%p1343_p9), %s298_s30, 4294967168  ;;  %p1344_p8 = scmp.eq.s32.totalorder %s1104_s24, 0 }
  0x69   : > { %995 = dma.done.wait (%p1344_p8), [#allocation6], 64   ;;  %p1345_p2 = pmov %p1344_p8 }
  0x6b   : > { %997 = vsyncadd (%p1345_p2), [#allocation6], 4294967232  ;;  %p1346_p6 = pmov %p1345_p2 }
  0x6c   : > { %p1347_p11 = pmov %p1345_p2 }
  0x6d   : > { %999 = dma.done.wait (%p1346_p6), [#allocation9], 1024  }
  0x6e   : > { %1001 = vsyncadd (%p1347_p11), [#allocation9], 4294966272  ;;  %v1038_v0 = vmov 0.0   ;;  %vm1039_vm0 = vmmov 0   ;;  %v820_v1 = vld [vmem:[#allocation8 + $0x38] sm:$0xff]   ;;  %v821_v2 = vld [vmem:[#allocation8 + $0x30] sm:$0xff]   ;;  %v366_v3 = vlaneseq }
  0x6f   : > { %704 = vmatprep.subr.bf16.mxu0 %v1038_v0  ;;  %720 = vmatprep.mubr.msk.bf16.mxu0 %vm1039_vm0, %v1038_v0  ;;  %v822_v4 = vld [vmem:[#allocation8 + $0x28] sm:$0xff]   ;;  %v823_v10 = vld [vmem:[#allocation8 + $0x20] sm:$0xff]   ;;  %v824_v14 = vld [vmem:[#allocation8 + $0x18] sm:$0xff]   ;;  %s340_s9 = scalar_lea.vmem [#allocation10], %s670_s2  ;;  %s694_s25 = sshll.u32 %s1020_s21, 8 }
  0x70   : > { %705 = vmatpush3.bf16.msra.mxu0 %v820_v1  ;;  %v367_v5 = vshrl.u32 %v366_v3, 7  ;;  %v348_v6 = vld [vmem:[%s292_s5] sm:$0xff]  ;;  %v349_v7 = vld [vmem:[%s292_s5 + $0x8] sm:$0xff]  ;;  %s526_s10 = sshll.u32 %s340_s9, 4  ;;  %s1348_s13 = sld [smem:[#allocation22_spill]]  ;;  %s1252_s10 = int_to_ptr.vmem [resolvable:$true] %s526_s10 }
  0x71   : > { %706 = vmatprep.subr.bf16.mxu0 %v1038_v0  ;;  %v350_v8 = vld [vmem:[%s301_s6] sm:$0xff]  ;;  %v364_v11 = vrot.slane %v348_v6, 7  ;;  %v365_v12 = vrot.slane %v349_v7, 7  ;;  %v381_v15 = vrot.slane %v348_v6, 6  ;;  %v675_v16 = vld [vmem:[#allocation7 + $0x2] ss:$0 sm:$0xff] }
  0x72   : > { %v355_v9 = vmul.f32 0.0, %v350_v8  ;;  %vm368_vm1 = vcmp.lt.s32.totalorder %v367_v5, 1  ;;  %v676_v19 = vld [vmem:[#allocation7 + $0x1] ss:$0 sm:$0xff]  ;;  %v382_v21 = vrot.slane %v349_v7, 6  ;;  %vm383_vm2 = vcmp.lt.s32.totalorder %v367_v5, 2 }
  0x73   : > { %v369_v17 = vsel %vm368_vm1, %v364_v11, %v365_v12  ;;  %v361_v22 = vmul.f32 %v675_v16, %v348_v6  ;;  %v362_v23 = vmul.f32 %v675_v16, %v349_v7  ;;  %v825_v26 = vld [vmem:[#allocation8 + $0x10] sm:$0xff]   ;;  %v677_v29 = vld [vmem:[#allocation7] ss:$0 sm:$0xff]  ;;  %v826_v34 = vld [vmem:[#allocation8 + $0x8] sm:$0xff]   ;;  %s511_s15 = scalar_lea.sflag [#allocation4], %s1222_s0  ;;  %s936_s26 = scalar_lea.vmem %s1252_s10, 256 }
  0x74   : > { %707 = vmatpush3.bf16.msra.mxu0 %v821_v2  ;;  %v363_v13 = vrot.slane %v355_v9, 7  ;;  %v380_v20 = vrot.slane %v355_v9, 6  ;;  %v377_v25 = vmul.f32 %v676_v19, %v369_v17  ;;  %v384_v27 = vsel %vm383_vm2, %v381_v15, %v382_v21  ;;  %v827_v37 = vld [vmem:[#allocation8] sm:$0xff]   ;;  %v678_v39 = vld [vmem:[%s1309_s4] ss:$0 sm:$0xff]  ;;  %p937_p1 = scmp.ne.s32.totalorder %s1252_s10, %s936_s26  ;;  %p1349_p0 = scmp.ne.s32.totalorder %s1328_s29, 0 }
  0x75   : > { %708 = vmatprep.subr.bf16.mxu0 %v1038_v0  ;;  %v392_v33 = vmul.f32 %v677_v29, %v384_v27  ;;  %s1040_s21 = smov [#allocation10]  }
  0x76   : > { %v370_v18 = vsel %vm368_vm1, %v363_v13, %v364_v11  ;;  %v385_v28 = vsel %vm383_vm2, %v380_v20, %v381_v15  ;;  %v379_v31 = vadd.f32 %v377_v25, %v362_v23  ;;  %s1257_s7 = scalar_lea.hbm %s1348_s13, %s694_s25  ;;  %p938_p10 = pnand %p937_p1, %p1349_p0 }
  0x77   : > { %v376_v24 = vmul.f32 %v676_v19, %v370_v18  ;;  %v391_v32 = vmul.f32 %v677_v29, %v385_v28  ;;  %s940_s16 = sshll.u32 %s1040_s21, 4  ;;  %s941_s16 = int_to_ptr.vmem [resolvable:$false] %s940_s16 }
  0x78   : > { %709 = vmatpush3.bf16.msra.mxu0 %v822_v4  ;;  %v394_v36 = vadd.f32 %v392_v33, %v379_v31  ;;  %p939_p5 = pneg %p938_p10  ;;  %s942_s27 = scalar_lea.vmem %s941_s16, 512 }
  0x79   : > { %710 = vmatprep.subr.bf16.mxu0 %v1038_v0  ;;  %v378_v30 = vadd.f32 %v376_v24, %v361_v22  ;;  %p943_p3 = scmp.lt.s32.totalorder %s1252_s10, %s941_s16  ;;  %p944_p7 = scmp.lt.s32.totalorder %s942_s27, %s936_s26 }
  0x7b   : > { %v393_v35 = vadd.f32 %v391_v32, %v378_v30  ;;  %p945_p12 = por %p944_p7, %p943_p3 }
  0x7c   : > { %711 = vmatpush3.bf16.msra.mxu0 %v823_v10 }
  0x7d   : > { %712 = vmatprep.subr.bf16.mxu0 %v1038_v0  ;;  %v395_v38 = vpack.c.bf16 %v394_v36, %v393_v35  ;;  %p946_p13 = pnand %p945_p12, %p939_p5 }
  0x80   : > { %713 = vmatpush3.bf16.msra.mxu0 %v824_v14 }
  0x81   : > { %714 = vmatprep.subr.bf16.mxu0 %v1038_v0 }
  0x84   : > { %715 = vmatpush3.bf16.msra.mxu0 %v825_v26 }
  0x85   : > { %716 = vmatprep.subr.bf16.mxu0 %v1038_v0 }
  0x88   : > { %717 = vmatpush3.bf16.msra.mxu0 %v826_v34 }
  0x89   : > { %718 = vmatprep.subr.bf16.mxu0 %v1038_v0 }
  0x8c   : > { %719 = vmatpush3.bf16.msra.mxu0 %v827_v37 }
  0x8f   : > { %721 = vmatmul.mubr.bf16.vlgmr.msra.gmra.mxu0 %v395_v38 }
 0x14f   : > { %v501_v40 = vpop.f32.mrf.mxu0 }
 0x150   : > { %v502_v41 = vadd.f32 %v678_v39, %v501_v40 }
 0x151   : > { %v722_v42 = vpop.f32.mrf.mxu0 }
 0x152   : > { %508 = vst [vmem:[%s340_s9] sm:$0xff] %v502_v41 }
 0x153   : > { %v504_v43 = vpop.f32.mrf.mxu0 }
 0x154   : > { %v505_v44 = vadd.f32 %v678_v39, %v504_v43 }
 0x155   : > { %v723_v45 = vpop.f32.mrf.mxu0 }
 0x156   : > { %509 = vst [vmem:[%s340_s9 + $0x8] sm:$0xff] %v505_v44 }
 0x157   : > { %949 = shalt.err (!%p946_p13)
}
 0x158   : > { %s950_s17 = scalar_lea.hbm %s1257_s7, 256  ;;  %s954_s5 = scalar_lea.hbm %s1348_s13, 512 }
 0x159   : > { %p951_p4 = scmp.ne.s32.totalorder %s1257_s7, %s950_s17  ;;  %p955_p2 = scmp.lt.s32.totalorder %s1257_s7, %s1348_s13 }
 0x15a   : > { %p956_p6 = scmp.lt.s32.totalorder %s954_s5, %s950_s17 }
 0x15b   : > { %p952_p9 = pnand %p951_p4, %p1349_p0 }
 0x15c   : > { %p957_p11 = por %p956_p6, %p955_p2 }
 0x15d   : > { %p953_p8 = pneg %p952_p9 }
 0x15f   : > { %p958_p1 = pnand %p957_p11, %p953_p8 }
 0x161   : > { %961 = shalt.err (!%p958_p1)
}
 0x162   : > { %s1041_s30 = smov 128   ;;  %s1042_s6 = smov 8  }
 0x163   : > { %736 = dma.vmem_to_hbm [thread:$0]  (%p1349_p0), %s1252_s10, 256, %s1257_s7, %s511_s15, %s1041_s30, %s1041_s30, %s1042_s6  }
 0x164 PF: > { %s1350_s24 = sld [smem:[#allocation16_spill]]  ;;  %p1353_p5 = scmp.ge.s32.totalorder %s1028_s23, 2 }
 0x165   : > { %s1351_s28 = sld [smem:[#allocation17_spill]] }
 0x16a   : > { %s541_s9 = sand.u32 1, %s1350_s24  }
 0x16b   : > { %p1352_p10 = scmp.ne.s32.totalorder %s1351_s28, 0  ;;  %s542_s25 = scalar_lea.sflag [#allocation4], %s541_s9 }
 0x16d   : > { %p753_p3 = pnand %p1353_p5, %p1352_p10 }
 0x16f   : > { %p754_p7 = pneg %p753_p3 }
 0x171   : > { %1003 = dma.done.wait (%p754_p7), %s542_s25, 256  }
 0x172   : > { %1005 = vsyncadd (%p754_p7), %s542_s25, 4294967040  ;;  %s25_s23 = sadd.s32 1, %s1028_s23   ;;  %s1354_s29 = sld [smem:[#allocation18_spill]] }
 0x173   : > { %p22_p12 = scmp.ge.s32.totalorder %s25_s23, 4   ;;  %s1355_s18 = smov %s1012_s19 }
 0x174   : > { %s1356_s19 = smov %s1016_s20  ;;  %s1357_s20 = smov %s1205_s14 }
 0x175   : > { %s1358_s21 = smov %s1024_s22  ;;  %24 = sbr.rel (!%p22_p12) target bundleno = 14 (0xe), region = 106 }
 0x178   : > { %s1359_s22 = smov %s1354_s29 }
 0x17a   :  { %547 = vsyncpa [#allocation3], 1 }
 0x17b   :  { %549 = vsyncpa [#allocation3 + $0x1], 1 }
 0x17c   :  { %550 = vsyncpa [#allocation6], 1 }
 0x17d   :  { %552 = vsyncpa [#allocation6 + $0x1], 1 }
 0x17e   :  { %553 = vsyncpa [#allocation9], 1 }
 0x17f   :  { %554 = vsyncpa [#allocation4], 1 }
 0x180   :  { %556 = vsyncpa [#allocation4 + $0x1], 1 }

</bundles_post_ra>
